<compile_context>
chip_gen: v6e
topology: v6e:2x2x1
jax: 0.10.0
libtpu: 0.0.40
codegen_flags: <defaults>
</compile_context>

<pallas_src>
import jax
import jax.numpy as jnp
from jax import lax
from jax.experimental import pallas as pl
from jax.experimental.pallas import tpu as pltpu


def specaugment_kernel(p_ref, x_ref, o_ref):
    """p_ref: (Bt, 1, 4) int32 = [freq_start, freq_end, time_start, time_end]
    per batch row; x_ref / o_ref: (Bt, M, Tt) block of the spectrogram."""
    x = x_ref[...]
    Bt, M, Tt = x.shape

    p = p_ref[...]                                  # (Bt, 1, 4) int32
    fs = p[:, :, 0:1]                               # (Bt, 1, 1)
    fe = p[:, :, 1:2]
    ts = p[:, :, 2:3]
    te = p[:, :, 3:4]

    # Factored masks: compares run on the small factored shapes; the OR below
    # broadcasts them to the full block, so full-size work is ~2 ops/element.
    mel_idx = lax.broadcasted_iota(jnp.int32, (Bt, M, 1), 1)
    t0 = pl.program_id(1) * Tt                      # global time offset of this block
    tim_idx = lax.broadcasted_iota(jnp.int32, (Bt, 1, Tt), 2) + t0

    freq_hit = (mel_idx >= fs) & (mel_idx < fe)     # (Bt, M, 1)
    time_hit = (tim_idx >= ts) & (tim_idx < te)     # (Bt, 1, Tt)

    zero = jnp.zeros((), dtype=x.dtype)
    o_ref[...] = jnp.where(freq_hit | time_hit, zero, x)


def _pick_tiles(B, M, T, itemsize, bytes_budget=4 << 20):
    """Pick (Bt, Tt).  Block ~= bytes_budget; in+out double-buffered => ~4x the
    block in VMEM, which fits every generation's scoped limit."""
    slab = M * T * itemsize                         # one full batch element
    if slab <= bytes_budget:
        Bt = max(1, min(B, bytes_budget // slab))
        Tt = T
    else:
        Bt = 1
        lanes = max(128, (bytes_budget // (M * itemsize)) // 128 * 128)
        Tt = min(T, lanes)                          # multiple of 128 (or full T)
    # If everything fits in one grid step but B >= 2, split the batch so the
    # "parallel" axis can feed both v7x TensorCores; on single-core chips this
    # only costs one extra ~0.35us grid step.
    nb, nt = -(-B // Bt), -(-T // Tt)
    if nb * nt < 2 and B >= 2:
        Bt = -(-B // 2)
    return Bt, Tt


def specaugment_apply(x, freq_pos, freq_len, time_pos, time_len):
    """x: (B, n_mels, T) float dtype; *_pos / *_len: (B,) int32.
    Returns the masked copy in x's dtype."""
    B, M, T = x.shape
    dtype = x.dtype
    itemsize = jnp.dtype(dtype).itemsize
    Bt, Tt = _pick_tiles(B, M, T, itemsize)
    nb, nt = pl.cdiv(B, Bt), pl.cdiv(T, Tt)

    fs = freq_pos.astype(jnp.int32)
    fe = (freq_pos + freq_len).astype(jnp.int32)
    ts = time_pos.astype(jnp.int32)
    te = (time_pos + time_len).astype(jnp.int32)
    params = jnp.stack([fs, fe, ts, te], axis=-1).reshape(B, 1, 4)

    x_spec = pl.BlockSpec((Bt, M, Tt), lambda b, t: (b, 0, t))
    p_spec = pl.BlockSpec((Bt, 1, 4), lambda b, t: (b, 0, 0))

    return pl.pallas_call(
        specaugment_kernel,
        out_shape=jax.ShapeDtypeStruct((B, M, T), dtype),
        grid_spec=pltpu.PrefetchScalarGridSpec(
            num_scalar_prefetch=0,
            grid=(nb, nt),
            in_specs=[p_spec, x_spec],
            out_specs=x_spec,
        ),
        compiler_params=pltpu.CompilerParams(
            dimension_semantics=("parallel", "parallel"),
            vmem_limit_bytes=32 << 20),
    )(params, x)


def sample_mask_params(key, B, n_mels, T, freq_mask_range=(0, 10),
                       time_mask_range=(0, 5)):
    """Mirror the torch.randint sampling of the module (same bounds, including
    the batch-max mask length bounding the position, as in the PyTorch code)."""
    kfl, kfp, ktl, ktp = jax.random.split(key, 4)
    freq_len = jax.random.randint(kfl, (B,), freq_mask_range[0],
                                  freq_mask_range[1], dtype=jnp.int32)
    time_len = jax.random.randint(ktl, (B,), time_mask_range[0],
                                  time_mask_range[1], dtype=jnp.int32)
    # Position high bound depends on the batch max length (a traced value), so
    # sample uniforms and scale instead of randint with a traced maxval.
    freq_hi = jnp.maximum(1, n_mels - jnp.max(freq_len)).astype(jnp.float32)
    time_hi = jnp.maximum(1, T - jnp.max(time_len)).astype(jnp.float32)
    freq_pos = jnp.floor(jax.random.uniform(kfp, (B,)) * freq_hi).astype(jnp.int32)
    time_pos = jnp.floor(jax.random.uniform(ktp, (B,)) * time_hi).astype(jnp.int32)
    return freq_pos, freq_len, time_pos, time_len


def specaugment(x, key, freq_mask_range=(0, 10), time_mask_range=(0, 5)):
    """Full forward equivalent of SpecAugment.forward (masks sampled here)."""
    B, M, T = x.shape
    fp, fl, tp, tl = sample_mask_params(key, B, M, T, freq_mask_range,
                                        time_mask_range)
    return specaugment_apply(x, fp, fl, tp, tl)


def reference(x, freq_pos, freq_len, time_pos, time_len):
    """Pure-JAX replica of the masking given the same sampled parameters."""
    B, M, T = x.shape
    mel = jnp.arange(M)[None, :, None]
    tim = jnp.arange(T)[None, None, :]
    fs = freq_pos[:, None, None]
    fe = (freq_pos + freq_len)[:, None, None]
    ts = time_pos[:, None, None]
    te = (time_pos + time_len)[:, None, None]
    hit = ((mel >= fs) & (mel < fe)) | ((tim >= ts) & (tim < te))
    return jnp.where(hit, jnp.zeros((), x.dtype), x)


if __name__ == "__main__":
    B, M, T = 2, 16, 32   # (batch, n_mels, time) -- small test shape

    key = jax.random.PRNGKey(0)
    kx, km = jax.random.split(key)
    x = jax.random.normal(kx, (B, M, T), dtype=jnp.float32)

    fp, fl, tp, tl = sample_mask_params(km, B, M, T)

    # float32 path
    out = jax.block_until_ready(specaugment_apply(x, fp, fl, tp, tl))
    ref = jax.block_until_ready(reference(x, fp, fl, tp, tl))
    assert out.shape == (B, M, T), out.shape
    assert out.dtype == x.dtype, out.dtype
    assert bool(jnp.all(jnp.isfinite(out)))
    assert bool(jnp.array_equal(out, ref))

    # bfloat16 pass-through (dtype-polymorphic path, no upcast)
    xb = x.astype(jnp.bfloat16)
    outb = jax.block_until_ready(specaugment_apply(xb, fp, fl, tp, tl))
    refb = jax.block_until_ready(reference(xb, fp, fl, tp, tl))
    assert outb.dtype == jnp.bfloat16, outb.dtype
    assert bool(jnp.array_equal(outb, refb))

    print("KERNEL_OK")
</pallas_src>

<mosaic_0001>
module attributes {stable_mosaic.version = 11 : i64} {
  func.func @specaugment_kernel(%arg0: i32, %arg1: i32, %arg2: memref<1x1x4xi32, #tpu.memory_space<vmem>>, %arg3: memref<1x16x32xf32, #tpu.memory_space<vmem>>, %arg4: memref<1x16x32xf32, #tpu.memory_space<vmem>>) attributes {dimension_semantics = [#tpu.dimension_semantics<parallel>, #tpu.dimension_semantics<parallel>], iteration_bounds = array<i64: 2, 1>, scalar_prefetch = 0 : i64, scratch_operands = 0 : i64, tpu.core_type = #tpu.core_type<tc>, window_params = [{transform_indices = @transform_0, window_bounds = array<i64: 1, 1, 4>}, {transform_indices = @transform_1, window_bounds = array<i64: 1, 16, 32>}, {transform_indices = @transform_2, window_bounds = array<i64: 1, 16, 32>}]} {
    %c0 = arith.constant 0 : index
    %c0_0 = arith.constant 0 : index
    %c0_1 = arith.constant 0 : index
    %0 = vector.load %arg3[%c0, %c0_0, %c0_1] : memref<1x16x32xf32, #tpu.memory_space<vmem>>, vector<1x16x32xf32>
    %c0_2 = arith.constant 0 : index
    %c0_3 = arith.constant 0 : index
    %c0_4 = arith.constant 0 : index
    %1 = vector.load %arg2[%c0_2, %c0_3, %c0_4] : memref<1x1x4xi32, #tpu.memory_space<vmem>>, vector<1x1x4xi32>
    %2 = vector.extract_strided_slice %1 {offsets = [0, 0, 0], sizes = [1, 1, 1], strides = [1, 1, 1]} : vector<1x1x4xi32> to vector<1x1x1xi32>
    %3 = vector.extract_strided_slice %1 {offsets = [0, 0, 1], sizes = [1, 1, 1], strides = [1, 1, 1]} : vector<1x1x4xi32> to vector<1x1x1xi32>
    %4 = vector.extract_strided_slice %1 {offsets = [0, 0, 2], sizes = [1, 1, 1], strides = [1, 1, 1]} : vector<1x1x4xi32> to vector<1x1x1xi32>
    %5 = vector.extract_strided_slice %1 {offsets = [0, 0, 3], sizes = [1, 1, 1], strides = [1, 1, 1]} : vector<1x1x4xi32> to vector<1x1x1xi32>
    %6 = tpu.iota {dimensions = array<i32: 1>} : vector<1x16x1xi32>
    %c32_i32 = arith.constant 32 : i32
    %7 = arith.muli %arg1, %c32_i32 : i32
    %8 = tpu.iota {dimensions = array<i32: 2>} : vector<1x1x32xi32>
    %9 = vector.broadcast %7 : i32 to vector<1x1x32xi32>
    %10 = arith.addi %8, %9 : vector<1x1x32xi32>
    %11 = vector.broadcast %2 : vector<1x1x1xi32> to vector<1x16x1xi32>
    %12 = arith.cmpi sge, %6, %11 : vector<1x16x1xi32>
    %13 = vector.broadcast %3 : vector<1x1x1xi32> to vector<1x16x1xi32>
    %14 = arith.cmpi slt, %6, %13 : vector<1x16x1xi32>
    %15 = arith.andi %12, %14 : vector<1x16x1xi1>
    %16 = vector.broadcast %4 : vector<1x1x1xi32> to vector<1x1x32xi32>
    %17 = arith.cmpi sge, %10, %16 : vector<1x1x32xi32>
    %18 = vector.broadcast %5 : vector<1x1x1xi32> to vector<1x1x32xi32>
    %19 = arith.cmpi slt, %10, %18 : vector<1x1x32xi32>
    %20 = arith.andi %17, %19 : vector<1x1x32xi1>
    %21 = vector.broadcast %15 : vector<1x16x1xi1> to vector<1x16x32xi1>
    %22 = vector.broadcast %20 : vector<1x1x32xi1> to vector<1x16x32xi1>
    %23 = arith.ori %21, %22 : vector<1x16x32xi1>
    %cst = arith.constant 0.000000e+00 : f32
    %24 = vector.broadcast %cst : f32 to vector<1x16x32xf32>
    %25 = arith.select %23, %24, %0 : vector<1x16x32xi1>, vector<1x16x32xf32>
    %c0_5 = arith.constant 0 : index
    %c0_6 = arith.constant 0 : index
    %c0_7 = arith.constant 0 : index
    %26 = vector.load %arg4[%c0_5, %c0_6, %c0_7] : memref<1x16x32xf32, #tpu.memory_space<vmem>>, vector<1x16x32xf32>
    tpu.vector_store %arg4[%c0_5, %c0_6, %c0_7], %25 {strides = array<i32>} : memref<1x16x32xf32, #tpu.memory_space<vmem>>, vector<1x16x32xf32>,
    return
  }
  func.func @transform_0(%arg0: i32, %arg1: i32) -> (i32, i32, i32) {
    %c0_i32 = arith.constant 0 : i32
    %c0_i32_0 = arith.constant 0 : i32
    %c0_i32_1 = arith.constant 0 : i32
    return %arg0, %c0_i32, %c0_i32_0 : i32, i32, i32
  }
  func.func @transform_1(%arg0: i32, %arg1: i32) -> (i32, i32, i32) {
    %c0_i32 = arith.constant 0 : i32
    %c0_i32_0 = arith.constant 0 : i32
    return %arg0, %c0_i32, %arg1 : i32, i32, i32
  }
  func.func @transform_2(%arg0: i32, %arg1: i32) -> (i32, i32, i32) {
    %c0_i32 = arith.constant 0 : i32
    %c0_i32_0 = arith.constant 0 : i32
    return %arg0, %c0_i32, %arg1 : i32, i32, i32
  }
}

</mosaic_0001>

<bundles_post_ra>
// kernel: tpu_custom_call.1
= control target key start
LH: loop header
LB: loop body
LE: loop exit
PB: predicated region body
PF: predicated region fallthrough
CT: control target
= control target key end

     0   :  { %7 = vsyncpa [#allocation3], 0  ;;  %s862_s0 = inlined_call_operand.hbm [shape: s32[2,1,4], index: 0, kind: input, shape index: {}]   ;;  %s863_s1 = inlined_call_operand.hbm [shape: f32[2,16,32], index: 1, kind: input, shape index: {}]   ;;  %s864_s2 = inlined_call_operand.hbm [shape: f32[2,16,32], index: 2, kind: output, shape index: {}]  }
   0x1   :  { %9 = vsyncpa [#allocation3 + $0x1], 0 }
   0x2   :  { %10 = vsyncpa [#allocation6], 0 }
   0x3   :  { %12 = vsyncpa [#allocation6 + $0x1], 0 }
   0x4   :  { %13 = vsyncpa [#allocation4], 0 }
   0x5   :  { %15 = vsyncpa [#allocation4 + $0x1], 0  ;;  %s663_s9 = smov 0   ;;  %s665_s10 = smov 0  }
   0x6   :  { %s667_s11 = smov 0   ;;  %s669_s12 = smov 0  }
   0x7   :  { %s671_s13 = smov 0   ;;  %s673_s14 = smov 0  }
   0x8 LB: > { %s398_s15 = sadd.s32 4294967295, %s635_s14   ;;  %s399_s16 = sadd.s32 4294967294, %s635_s14   ;;  %s635_s14 = sphi %s673_s14, %s21_s14   ;;  %s631_s13 = sphi %s671_s13, %s880_s13   ;;  %s627_s12 = sphi %s669_s12, %s879_s12   ;;  %s623_s11 = sphi %s667_s11, %s878_s11   ;;  %s619_s10 = sphi %s665_s10, %s877_s10   ;;  %s615_s9 = sphi %s663_s9, %s876_s9  }
   0x9   : > { %s33_s17 = sadd.s32 1, %s631_s13  ;;  %s40_s18 = sadd.s32 1, %s623_s11 }
   0xa   : > { %p35_p0 = scmp.ge.s32.totalorder %s33_s17, 2  ;;  %p47_p1 = scmp.ne.s32.totalorder %s623_s11, %s619_s10 }
   0xb   : > { %p48_p2 = scmp.eq.s32.totalorder %s635_s14, 0  ;;  %p53_p3 = scmp.ne.s32.totalorder %s619_s10, %s615_s9 }
   0xc   : > { %s882_s17 = smov (%p35_p0, %s33_s17), 0  ;;  %p54_p5 = scmp.eq.s32.totalorder %s398_s15, 0 }
   0xd   : > { %p704_p4 = por %p48_p2, %p47_p1  ;;  %s37_s20 = ssub.s32 %s631_s13, %s882_s17 }
   0xe   : > { %p107_p6 = scmp.eq.s32.totalorder %s398_s15, 1  ;;  %p38_p7 = scmp.eq.s32.totalorder %s37_s20, 0 }
   0xf   : > { %p710_p8 = por %p54_p5, %p53_p3  ;;  %p113_p10 = scmp.eq.s32.totalorder %s399_s16, 1 }
  0x10   : > { %p714_p9 = por %p107_p6, %p47_p1  ;;  %p433_p13 = scmp.lt.s32.totalorder %s635_s14, 2 }
  0x11   : > { %s719_s23 = scalar_select %p38_p7, %s623_s11, %s40_s18  }
  0x12   : > { %p721_p11 = por %p113_p10, %p53_p3  ;;  %s728_s25 = sand.u32 1, %s623_s11  }
  0x13   : > { %s402_s26 = sshll.u32 %s631_s13, 4  ;;  %s136_s27 = scalar_lea.vmem [#allocation2], %s728_s25 }
  0x14   : > { %s143_s28 = sshll.u32 %s136_s27, 4  ;;  %s141_s3 = scalar_lea.hbm %s862_s0, %s402_s26  ;;  %s144_s28 = int_to_ptr.vmem [resolvable:$true] %s143_s28 }
  0x15   : > { %p737_p0 = pnand %p433_p13, %p704_p4  ;;  %p406_p1 = scmp.ge.s32.totalorder %s635_s14, 1 }
  0x16   : > { %p170_p2 = scmp.lt.s32.totalorder %s635_s14, 3  ;;  %s403_s5 = sshll.u32 %s728_s25, 4 }
  0x17   : > { %s134_s6 = scalar_lea.sflag [#allocation3], %s728_s25  ;;  %p497_p3 = pneg %p737_p0 }
  0x18   : > { %s508_s7 = scalar_lea.vmem %s144_s28, 16  ;;  %s637_s8 = smov [#allocation2]  }
  0x19   : > { %p509_p5 = scmp.ne.s32.totalorder %s144_s28, %s508_s7  ;;  %s513_s15 = sshll.u32 %s637_s8, 4  ;;  %s514_s15 = int_to_ptr.vmem [resolvable:$false] %s513_s15 }
  0x1a   : > { %s515_s16 = scalar_lea.vmem %s514_s15, 32  ;;  %p516_p4 = scmp.lt.s32.totalorder %s144_s28, %s514_s15 }
  0x1b   : > { %p511_p6 = pnand %p509_p5, %p497_p3  ;;  %p517_p10 = scmp.lt.s32.totalorder %s515_s16, %s508_s7 }
  0x1d   : > { %p512_p7 = pneg %p511_p6  ;;  %p518_p13 = por %p517_p10, %p516_p4 }
  0x1f   : > { %p519_p12 = pnand %p518_p13, %p512_p7 }
  0x21   : > { %522 = shalt.err (!%p519_p12)
}
  0x22   : > { %425 = dma.hbm_to_vmem [thread:$0]  (!%p737_p0), %s141_s3, 16, %s144_s28, %s134_s6  }
  0x23   : > { %p756_p5 = pnand %p406_p1, %p170_p2  ;;  %s414_s19 = sshll.u32 %s631_s13, 8 }
  0x24   : > { %s154_s20 = scalar_lea.vmem [#allocation5], %s403_s5  ;;  %s161_s30 = scalar_lea.hbm %s863_s1, %s414_s19 }
  0x25   : > { %s162_s26 = sshll.u32 %s154_s20, 4  ;;  %s151_s7 = scalar_lea.sflag [#allocation6], %s728_s25  ;;  %s163_s26 = int_to_ptr.vmem [resolvable:$true] %s162_s26 }
  0x26   : > { %s536_s8 = scalar_lea.vmem %s163_s26, 256  ;;  %s638_s28 = smov [#allocation5]  }
  0x27   : > { %p537_p12 = scmp.ne.s32.totalorder %s163_s26, %s536_s8  ;;  %s541_s3 = sshll.u32 %s638_s28, 4  ;;  %s542_s3 = int_to_ptr.vmem [resolvable:$false] %s541_s3 }
  0x28   : > { %s543_s6 = scalar_lea.vmem %s542_s3, 512  ;;  %p544_p1 = scmp.lt.s32.totalorder %s163_s26, %s542_s3 }
  0x29   : > { %p539_p6 = pnand %p537_p12, %p497_p3  ;;  %p545_p2 = scmp.lt.s32.totalorder %s543_s6, %s536_s8 }
  0x2b   : > { %p540_p7 = pneg %p539_p6  ;;  %p546_p4 = por %p545_p2, %p544_p1 }
  0x2d   : > { %p547_p10 = pnand %p546_p4, %p540_p7 }
  0x2f   : > { %550 = shalt.err (!%p547_p10)
}
  0x30   : > { %s639_s5 = smov 128   ;;  %s640_s15 = smov 8  }
  0x31   : > { %428 = dma.hbm_to_vmem [thread:$0]  (!%p737_p0), %s161_s30, 256, %s163_s26, %s151_s7, %s639_s5, %s639_s5, %s640_s15  }
  0x32   : > { %174 = sbr.rel (%p756_p5) target bundleno = 332 (0x14c), region = 28  ;;  %s773_s25 = sand.u32 (!%p756_p5), 1, %s619_s10  }
  0x33   : > { %s177_s16 = scalar_lea.sflag (!%p756_p5), [#allocation3], %s773_s25  ;;  %s179_s19 = scalar_lea.vmem (!%p756_p5), [#allocation2], %s773_s25 }
  0x37   : > { %602 = dma.done.wait (%p710_p8), %s177_s16, 16  }
  0x38   : > { %604 = vsyncadd (%p710_p8), %s177_s16, 4294967280  ;;  %s407_s4 = sshll.u32 %s773_s25, 4  ;;  %s185_s18 = scalar_lea.sflag [#allocation6], %s773_s25 }
  0x39   : > { %s785_s20 = scalar_lea.vmem [#allocation5], %s407_s4 }
  0x3a   : > { %606 = dma.done.wait (%p710_p8), %s185_s18, 256  }
  0x3b   : > { %608 = vsyncadd (%p710_p8), %s185_s18, 4294967040  ;;  %v216_v0 = vlaneseq  ;;  %v641_v1 = vmov 2   ;;  %v642_v2 = vmov 0   ;;  %v215_v6 = vld [vmem:[%s179_s19] sm:$0x1]  ;;  %s643_s26 = smov 127  }
  0x3c   : > { %491 = vset.pattern.permute.xlu1 %v641_v1  ;;  %493 = vset.pattern.permute.xlu0 %v642_v2  ;;  %v644_v9 = vmov 3   ;;  %v213_v23 = vld [vmem:[%s785_s20] sm:$0xff]  ;;  %vm275_vm11 = vcmask 261120   ;;  %s212_s21 = scalar_lea.vmem [#allocation7], %s407_s4  ;;  %s415_s29 = sshll.u32 %s627_s12, 8  ;;  %v214_v26 = vld [vmem:[%s785_s20 + $0x8] sm:$0xff] }
  0x3d   : > { %v217_v3 = vshrl.u32 %v216_v0, 7  ;;  %243 = vperm.xlu1 %491, %v215_v6   ;;  %v221_v17 = vand.u32 127, %v216_v0  ;;  %s293_s27 = sshll.u32 %s212_s21, 4  ;;  %s814_s8 = scalar_lea.hbm %s864_s2, %s415_s29  ;;  %s808_s27 = int_to_ptr.vmem [resolvable:$true] %s293_s27 }
  0x3e   : > { %s279_s28 = scalar_lea.sflag [#allocation4], %s773_s25  ;;  %s551_s12 = scalar_lea.vmem %s808_s27, 256 }
  0x3f   : > { %v226_v4 = vsub.s32 0, %v217_v3  ;;  %v218_v5 = vadd.s32 8, %v217_v3  ;;  %p552_p8 = scmp.ne.s32.totalorder %s808_s27, %s551_s12  ;;  %s645_s3 = smov [#allocation7]  }
  0x40   : > { %s555_s6 = sshll.u32 %s645_s3, 4  ;;  %s556_s6 = int_to_ptr.vmem [resolvable:$false] %s555_s6 }
  0x41   : > { %v227_v7 = vrot.slane %v215_v6, %v226_v4  ;;  %492 = vset.pattern.permute.xlu1 %v644_v9  ;;  %p553_p0 = pnand %p552_p8, %p714_p9  ;;  %s557_s5 = scalar_lea.vmem %s556_s6, 512 }
  0x42   : > { %251 = vperm.xlu1 %492, %v215_v6   ;;  %p558_p13 = scmp.lt.s32.totalorder %s808_s27, %s556_s6  ;;  %p559_p5 = scmp.lt.s32.totalorder %s557_s5, %s551_s12 }
  0x43   : > { %vm230_vm0 = vcmp.lt.s32.totalorder %v217_v3, %v227_v7  ;;  %vm231_vm1 = vcmp.lt.s32.totalorder %v218_v5, %v227_v7  ;;  %vm228_vm2 = vcmp.ge.s32.totalorder %v217_v3, %v227_v7  ;;  %vm229_vm3 = vcmp.ge.s32.totalorder %v218_v5, %v227_v7  ;;  %p554_p3 = pneg %p553_p0 }
  0x44   : > { %v232_v8 = vsel %vm230_vm0, 1, %v642_v2  ;;  %v233_v10 = vsel %vm231_vm1, 1, %v642_v2  ;;  %p560_p12 = por %p559_p5, %p558_p13 }
  0x45   : > { %234 = vrot.lane.b32.xlu0 %v232_v8, %s643_s26 }
  0x46   : > { %494 = vset.pattern.permute.xlu1 %v642_v2  ;;  %p561_p6 = pnand %p560_p12, %p554_p3 }
  0x49   : > { %236 = vrot.lane.b32.xlu0 %v233_v10, %s643_s26 }
  0xb7   : > { %v235_v11 = vpop.permute.xlu0 %234 }
  0xb8   : > { %vm238_vm4 = vcmp.ne.s32.totalorder %v235_v11, 0  ;;  %v244_v15 = vpop.permute.xlu1 %243 }
  0xb9   : > { %vm240_vm5 = vmand %vm228_vm2, %vm238_vm4  ;;  %v248_v18 = vrot.slane %v244_v15, %v226_v4 }
  0xba   : > { %v259_v12 = vsel %vm240_vm5, 1, %v642_v2 }
  0xbb   : > { %v237_v13 = vpop.permute.xlu0 %236  ;;  %262 = vperm.xlu0 %493, %v259_v12   ;;  %vm792_vm8 = vcmp.ge.s32.totalorder %v221_v17, %v248_v18 }
  0xbc   : > { %vm239_vm6 = vcmp.ne.s32.totalorder %v237_v13, 0 }
  0xbd   : > { %vm241_vm7 = vmand %vm229_vm3, %vm239_vm6  ;;  %v252_v16 = vpop.permute.xlu1 %251 }
  0xbe   : > { %v260_v14 = vsel %vm241_vm7, 1, %v642_v2  ;;  %v256_v19 = vrot.slane %v252_v16, %v226_v4 }
  0xbf   : > { %265 = vperm.xlu1 %494, %v260_v14  }
  0xc0   : > { %vm796_vm9 = vcmp.lt.s32.totalorder %v221_v17, %v256_v19 }
  0xc1   : > { %vm258_vm10 = vmand %vm792_vm8, %vm796_vm9 }
 0x136   : > { %v263_v22 = vpop.permute.xlu0 %262 }
 0x137   : > { %vm267_vm12 = vcmp.eq.s32.totalorder %v263_v22, 1 }
 0x138   : > { %vm271_vm13 = vmor %vm267_vm12, %vm258_vm10 }
 0x139   : > { %v273_v24 = vsel %vm271_vm13, 0.0, %v213_v23 }
 0x13a   : > { %276 = vst.msk [vmem:[%s212_s21] sm:$0xff] %vm275_vm11, %v273_v24  ;;  %v266_v25 = vpop.permute.xlu1 %265 }
 0x13b   : > { %vm268_vm14 = vcmp.eq.s32.totalorder %v266_v25, 1 }
 0x13c   : > { %vm272_vm15 = vmor %vm268_vm14, %vm258_vm10 }
 0x13d   : > { %v274_v27 = vsel %vm272_vm15, 0.0, %v214_v26 }
 0x13e   : > { %277 = vst.msk [vmem:[%s212_s21 + $0x8] sm:$0xff] %vm275_vm11, %v274_v27 }
 0x13f   : > { %564 = shalt.err (!%p561_p6)
}
 0x140   : > { %s565_s15 = scalar_lea.hbm %s814_s8, 256  ;;  %s569_s4 = scalar_lea.hbm %s864_s2, 512 }
 0x141   : > { %p566_p7 = scmp.ne.s32.totalorder %s814_s8, %s565_s15  ;;  %p570_p4 = scmp.lt.s32.totalorder %s814_s8, %s864_s2 }
 0x142   : > { %p571_p10 = scmp.lt.s32.totalorder %s569_s4, %s565_s15 }
 0x143   : > { %p567_p1 = pnand %p566_p7, %p714_p9 }
 0x144   : > { %p572_p8 = por %p571_p10, %p570_p4 }
 0x145   : > { %p568_p2 = pneg %p567_p1 }
 0x147   : > { %p573_p0 = pnand %p572_p8, %p568_p2 }
 0x149   : > { %576 = shalt.err (!%p573_p0)
}
 0x14a   : > { %s646_s26 = smov 128   ;;  %s647_s21 = smov 8  }
 0x14b   : > { %420 = dma.vmem_to_hbm [thread:$0]  (%p714_p9), %s808_s27, 256, %s814_s8, %s279_s28, %s646_s26, %s646_s26, %s647_s21  }
 0x14c PF: > { %s308_s29 = sand.u32 1, %s615_s9   ;;  %p875_p3 = scmp.ge.s32.totalorder %s635_s14, 2 }
 0x14d   : > { %s309_s30 = scalar_lea.sflag [#allocation4], %s308_s29 }
 0x14e   : > { %p430_p13 = pnand %p875_p3, %p721_p11 }
 0x150   : > { %p431_p5 = pneg %p430_p13 }
 0x152   : > { %610 = dma.done.wait (%p431_p5), %s309_s30, 256  }
 0x153   : > { %612 = vsyncadd (%p431_p5), %s309_s30, 4294967040  ;;  %s21_s14 = sadd.s32 1, %s635_s14   ;;  %s876_s9 = smov %s619_s10 }
 0x154   : > { %p18_p12 = scmp.ge.s32.totalorder %s21_s14, 4   ;;  %s877_s10 = smov %s623_s11 }
 0x155   : > { %s878_s11 = smov %s719_s23  ;;  %s879_s12 = smov %s631_s13 }
 0x156   : > { %s880_s13 = smov %s882_s17  ;;  %20 = sbr.rel (!%p18_p12) target bundleno = 8 (0x8), region = 86 }
 0x15b   :  { %314 = vsyncpa [#allocation3], 1 }
 0x15c   :  { %316 = vsyncpa [#allocation3 + $0x1], 1 }
 0x15d   :  { %317 = vsyncpa [#allocation6], 1 }
 0x15e   :  { %319 = vsyncpa [#allocation6 + $0x1], 1 }
 0x15f   :  { %320 = vsyncpa [#allocation4], 1 }
 0x160   :  { %322 = vsyncpa [#allocation4 + $0x1], 1 }

</bundles_post_ra>
